<compile_context>
chip_gen: v7x
topology: tpu7x:2x2x1
jax: 0.10.0
libtpu: 0.0.40
codegen_flags: <defaults>
</compile_context>

<pallas_src>
import jax
import jax.numpy as jnp
from jax.experimental import pallas as pl
from jax.experimental.pallas import tpu as pltpu

NUM_BINS = 16
NUM_CLASSES = NUM_BINS + 1  # 17


def _dfl_kernel(logits_ref, tgt_ref, w_ref, out_ref):
    # logits_ref: (NUM_CLASSES, tm)  classes on sublanes, rows on lanes
    # tgt_ref, w_ref: (1, tm)
    # out_ref: (8, 128) resident per-core partial-sum block (value replicated)
    i = pl.program_id(1)

    @pl.when(i == 0)
    def _():
        out_ref[...] = jnp.zeros_like(out_ref)

    x = logits_ref[...].astype(jnp.float32)                            # (17, tm)
    t = jnp.clip(tgt_ref[...].astype(jnp.float32), -8.0, 8.0) + 8.0    # (1, tm) in [0, 16]

    dist_l_f = jnp.floor(t)                   # t >= 0 so floor == trunc (.long())
    dist_l = dist_l_f.astype(jnp.int32)       # (1, tm)
    wl = (dist_l_f + 1.0) - t
    wr = t - dist_l_f

    # Fused two-hot gather. Note: if t hits the +8 clamp exactly, dist_r == 17
    # never matches a class row, but then wr == 0 so that term vanishes anyway
    # (matches / is benign w.r.t. the reference).
    row = jax.lax.broadcasted_iota(jnp.int32, x.shape, 0)               # (17, tm)
    two_hot = (jnp.where(row == dist_l, wl, 0.0)
               + jnp.where(row == dist_l + 1, wr, 0.0))                 # (17, tm)
    gathered = jnp.sum(x * two_hot, axis=0, keepdims=True)              # (1, tm)

    # Stable log-sum-exp over the 17 classes (sublane axis).
    m = jnp.max(x, axis=0, keepdims=True)
    lse = jnp.log(jnp.sum(jnp.exp(x - m), axis=0, keepdims=True)) + m   # (1, tm)

    # cross_entropy fused:  lse*(wl+wr) - (x[l]*wl + x[r]*wr)  with wl+wr == 1.
    loss = (lse - gathered) * w_ref[...].astype(jnp.float32)            # (1, tm)

    # Accumulate into the resident per-core output block (broadcast scalar).
    out_ref[...] += jnp.sum(loss, axis=(0, 1), keepdims=True)


def distribution_focal_loss(box_regression, reg_targets, dfl_weights=None,
                            avg_factor=8.0, tm=2048, n_split=2):
    # avg_factor is stored by the PyTorch module but unused in forward(); kept for parity.
    del avg_factor
    n = box_regression.shape[0]
    m = n * 8

    # Lane-dense layout: classes on sublanes, the M = N*8 rows on lanes.
    # Inputs stay in their native dtype; the kernel promotes to f32.
    logits = box_regression.reshape(m, NUM_CLASSES).T                   # (17, M)
    targets = reg_targets.reshape(1, m)
    if dfl_weights is None:
        weights = jnp.ones((1, m), jnp.float32)
    else:
        weights = dfl_weights.reshape(1, m)

    # Tile size: multiple of 128 lanes, no larger than needed.
    tm = max(128, min(int(tm), pl.cdiv(m, 128) * 128))
    tm = pl.cdiv(tm, 128) * 128

    # Pad M to a multiple of n_split * tm. Padded rows get weight 0 (invariant:
    # jnp.pad below always zero-fills weights), so they do not affect the sum.
    m_pad = pl.cdiv(m, n_split * tm) * (n_split * tm)
    pad = m_pad - m
    if pad:
        logits = jnp.pad(logits, ((0, 0), (0, pad)))
        targets = jnp.pad(targets, ((0, 0), (0, pad)))
        weights = jnp.pad(weights, ((0, 0), (0, pad)))

    tiles_per_core = m_pad // (n_split * tm)

    b_it = jnp.dtype(logits.dtype).itemsize
    t_it = jnp.dtype(targets.dtype).itemsize
    w_it = jnp.dtype(weights.dtype).itemsize
    cost = pl.CostEstimate(
        flops=6 * NUM_CLASSES * m_pad,
        transcendentals=(NUM_CLASSES + 1) * m_pad,
        bytes_accessed=m_pad * (NUM_CLASSES * b_it + t_it + w_it) + n_split * 8 * 128 * 4,
    )

    out = pl.pallas_call(
        _dfl_kernel,
        out_shape=jax.ShapeDtypeStruct((n_split * 8, 128), jnp.float32),
        grid_spec=pltpu.PrefetchScalarGridSpec(
            num_scalar_prefetch=0,
            grid=(n_split, tiles_per_core),
            in_specs=[
                pl.BlockSpec((NUM_CLASSES, tm),
                             lambda c, i: (0, c * tiles_per_core + i)),
                pl.BlockSpec((1, tm),
                             lambda c, i: (0, c * tiles_per_core + i)),
                pl.BlockSpec((1, tm),
                             lambda c, i: (0, c * tiles_per_core + i)),
            ],
            out_specs=pl.BlockSpec((8, 128), lambda c, i: (c, 0)),
        ),
        compiler_params=pltpu.CompilerParams(
            dimension_semantics=("parallel", "arbitrary")),
        cost_estimate=cost,
    )(logits, targets, weights)

    # Each core's (8,128) block holds its partial sum replicated; pick one
    # element per core, sum, and take the mean over the true M elements.
    partials = out[::8, 0]                                              # (n_split,)
    return jnp.sum(partials) / jnp.float32(m)


def _reference_loss(box_regression, reg_targets, dfl_weights=None):
    t = (jnp.clip(reg_targets, -8.0, 8.0) + 8.0).reshape(-1)
    dl = jnp.floor(t).astype(jnp.int32)
    dr = dl + 1
    wl = dr.astype(jnp.float32) - t
    wr = t - dl.astype(jnp.float32)
    logits = box_regression.reshape(-1, NUM_CLASSES)
    logp = jax.nn.log_softmax(logits, axis=-1)
    ce_l = -jnp.take_along_axis(logp, dl[:, None], axis=-1)[:, 0]
    ce_r = -jnp.take_along_axis(logp, jnp.minimum(dr, NUM_BINS)[:, None], axis=-1)[:, 0]
    loss = ce_l * wl + ce_r * wr
    if dfl_weights is not None:
        loss = loss * dfl_weights.reshape(-1)
    return loss.mean()


if __name__ == "__main__":
    key = jax.random.PRNGKey(0)
    k1, k2, k3 = jax.random.split(key, 3)

    N = 16
    box_regression = jax.random.normal(k1, (N, 8 * NUM_CLASSES), dtype=jnp.float32)
    # Targets strictly inside (-8, 8) so dist_r stays a valid class index
    # (the PyTorch reference requires this too).
    reg_targets = jax.random.uniform(k2, (N, 8), minval=-7.5, maxval=7.5, dtype=jnp.float32)
    dfl_weights = jax.random.uniform(k3, (N * 8,), minval=0.5, maxval=1.5, dtype=jnp.float32)

    # unweighted
    out = distribution_focal_loss(box_regression, reg_targets)
    jax.block_until_ready(out)
    ref = _reference_loss(box_regression, reg_targets)
    assert jnp.allclose(out, ref, rtol=1e-5, atol=1e-5), (out, ref)

    # weighted
    out_w = distribution_focal_loss(box_regression, reg_targets, dfl_weights)
    jax.block_until_ready(out_w)
    ref_w = _reference_loss(box_regression, reg_targets, dfl_weights)
    assert jnp.allclose(out_w, ref_w, rtol=1e-5, atol=1e-5), (out_w, ref_w)

    print("KERNEL_OK")
</pallas_src>

<mosaic_0001>
module attributes {stable_mosaic.version = 11 : i64} {
  func.func @_dfl_kernel(%arg0: i32, %arg1: i32, %arg2: memref<17x128xf32, #tpu.memory_space<vmem>>, %arg3: memref<1x128xf32, #tpu.memory_space<vmem>>, %arg4: memref<1x128xf32, #tpu.memory_space<vmem>>, %arg5: memref<8x128xf32, #tpu.memory_space<vmem>>) attributes {dimension_semantics = [#tpu.dimension_semantics<parallel>, #tpu.dimension_semantics<arbitrary>], iteration_bounds = array<i64: 2, 1>, scalar_prefetch = 0 : i64, scratch_operands = 0 : i64, tpu.core_type = #tpu.core_type<tc>, window_params = [{transform_indices = @transform_0, window_bounds = array<i64: 17, 128>}, {transform_indices = @transform_1, window_bounds = array<i64: 1, 128>}, {transform_indices = @transform_2, window_bounds = array<i64: 1, 128>}, {transform_indices = @transform_3, window_bounds = array<i64: 8, 128>}]} {
    %c0_i32 = arith.constant 0 : i32
    %0 = arith.cmpi eq, %arg1, %c0_i32 : i32
    %1 = arith.extui %0 : i1 to i32
    %c0_i32_0 = arith.constant 0 : i32
    %2 = arith.cmpi ne, %1, %c0_i32_0 : i32
    scf.if %2 {
      %cst_19 = arith.constant 0.000000e+00 : f32
      %57 = vector.broadcast %cst_19 : f32 to vector<8x128xf32>
      %c0_20 = arith.constant 0 : index
      %c0_21 = arith.constant 0 : index
      %58 = vector.load %arg5[%c0_20, %c0_21] : memref<8x128xf32, #tpu.memory_space<vmem>>, vector<8x128xf32>
      tpu.vector_store %arg5[%c0_20, %c0_21], %57 {strides = array<i32>} : memref<8x128xf32, #tpu.memory_space<vmem>>, vector<8x128xf32>,
    } else {
    }
    %c0 = arith.constant 0 : index
    %c0_1 = arith.constant 0 : index
    %3 = vector.load %arg2[%c0, %c0_1] : memref<17x128xf32, #tpu.memory_space<vmem>>, vector<17x128xf32>
    %c0_2 = arith.constant 0 : index
    %c0_3 = arith.constant 0 : index
    %4 = vector.load %arg3[%c0_2, %c0_3] : memref<1x128xf32, #tpu.memory_space<vmem>>, vector<1x128xf32>
    %cst = arith.constant -8.000000e+00 : f32
    %cst_4 = arith.constant 8.000000e+00 : f32
    %5 = vector.broadcast %cst : f32 to vector<1x128xf32>
    %6 = arith.maximumf %5, %4 : vector<1x128xf32>
    %7 = vector.broadcast %cst_4 : f32 to vector<1x128xf32>
    %8 = arith.minimumf %7, %6 : vector<1x128xf32>
    %cst_5 = arith.constant 8.000000e+00 : f32
    %9 = vector.broadcast %cst_5 : f32 to vector<1x128xf32>
    %10 = arith.addf %8, %9 : vector<1x128xf32>
    %11 = math.floor %10 : vector<1x128xf32>
    %12 = arith.fptosi %11 : vector<1x128xf32> to vector<1x128xi32>
    %cst_6 = arith.constant 1.000000e+00 : f32
    %13 = vector.broadcast %cst_6 : f32 to vector<1x128xf32>
    %14 = arith.addf %11, %13 : vector<1x128xf32>
    %15 = arith.subf %14, %10 : vector<1x128xf32>
    %16 = arith.subf %10, %11 : vector<1x128xf32>
    %17 = tpu.iota {dimensions = array<i32: 0>} : vector<17x128xi32>
    %18 = vector.broadcast %12 : vector<1x128xi32> to vector<17x128xi32>
    %19 = arith.cmpi eq, %17, %18 : vector<17x128xi32>
    %cst_7 = arith.constant 0.000000e+00 : f32
    %20 = vector.shape_cast %15 : vector<1x128xf32> to vector<1x128xf32>
    %21 = vector.broadcast %20 : vector<1x128xf32> to vector<17x128xf32>
    %22 = vector.broadcast %cst_7 : f32 to vector<17x128xf32>
    %23 = arith.select %19, %21, %22 : vector<17x128xi1>, vector<17x128xf32>
    %c1_i32 = arith.constant 1 : i32
    %24 = vector.broadcast %c1_i32 : i32 to vector<1x128xi32>
    %25 = arith.addi %12, %24 : vector<1x128xi32>
    %26 = vector.broadcast %25 : vector<1x128xi32> to vector<17x128xi32>
    %27 = arith.cmpi eq, %17, %26 : vector<17x128xi32>
    %cst_8 = arith.constant 0.000000e+00 : f32
    %28 = vector.shape_cast %16 : vector<1x128xf32> to vector<1x128xf32>
    %29 = vector.broadcast %28 : vector<1x128xf32> to vector<17x128xf32>
    %30 = vector.broadcast %cst_8 : f32 to vector<17x128xf32>
    %31 = arith.select %27, %29, %30 : vector<17x128xi1>, vector<17x128xf32>
    %32 = arith.addf %23, %31 : vector<17x128xf32>
    %33 = arith.mulf %3, %32 : vector<17x128xf32>
    %cst_9 = arith.constant dense<0.000000e+00> : vector<128xf32>
    %34 = vector.multi_reduction <add>, %33, %cst_9 [0] : vector<17x128xf32> to vector<128xf32>
    %35 = vector.shape_cast %34 : vector<128xf32> to vector<1x128xf32>
    %cst_10 = arith.constant dense<0xFF800000> : vector<128xf32>
    %36 = vector.multi_reduction <maximumf>, %3, %cst_10 [0] : vector<17x128xf32> to vector<128xf32>
    %37 = vector.shape_cast %36 : vector<128xf32> to vector<1x128xf32>
    %38 = vector.broadcast %37 : vector<1x128xf32> to vector<17x128xf32>
    %39 = arith.subf %3, %38 : vector<17x128xf32>
    %40 = math.exp %39 : vector<17x128xf32>
    %cst_11 = arith.constant dense<0.000000e+00> : vector<128xf32>
    %41 = vector.multi_reduction <add>, %40, %cst_11 [0] : vector<17x128xf32> to vector<128xf32>
    %42 = vector.shape_cast %41 : vector<128xf32> to vector<1x128xf32>
    %43 = math.log %42 : vector<1x128xf32>
    %44 = arith.addf %43, %37 : vector<1x128xf32>
    %45 = arith.subf %44, %35 : vector<1x128xf32>
    %c0_12 = arith.constant 0 : index
    %c0_13 = arith.constant 0 : index
    %46 = vector.load %arg4[%c0_12, %c0_13] : memref<1x128xf32, #tpu.memory_space<vmem>>, vector<1x128xf32>
    %47 = arith.mulf %45, %46 : vector<1x128xf32>
    %c0_14 = arith.constant 0 : index
    %c0_15 = arith.constant 0 : index
    %48 = vector.load %arg5[%c0_14, %c0_15] : memref<8x128xf32, #tpu.memory_space<vmem>>, vector<8x128xf32>
    %49 = vector.shape_cast %47 : vector<1x128xf32> to vector<1x1x128xf32>
    %cst_16 = arith.constant dense<0.000000e+00> : vector<1xf32>
    %50 = vector.multi_reduction <add>, %49, %cst_16 [1, 2] : vector<1x1x128xf32> to vector<1xf32>
    %51 = vector.shape_cast %50 : vector<1xf32> to vector<1x1x1xf32>
    %52 = vector.extract %51[0, 0, 0] : f32 from vector<1x1x1xf32>
    %53 = vector.broadcast %52 : f32 to vector<1x1xf32>
    %54 = vector.broadcast %53 : vector<1x1xf32> to vector<8x128xf32>
    %55 = arith.addf %48, %54 : vector<8x128xf32>
    %c0_17 = arith.constant 0 : index
    %c0_18 = arith.constant 0 : index
    %56 = vector.load %arg5[%c0_17, %c0_18] : memref<8x128xf32, #tpu.memory_space<vmem>>, vector<8x128xf32>
    tpu.vector_store %arg5[%c0_17, %c0_18], %55 {strides = array<i32>} : memref<8x128xf32, #tpu.memory_space<vmem>>, vector<8x128xf32>,
    return
  }
  func.func @transform_0(%arg0: i32, %arg1: i32) -> (i32, i32) {
    %c1_i32 = arith.constant 1 : i32
    %0 = arith.muli %arg0, %c1_i32 : i32
    %1 = arith.addi %0, %arg1 : i32
    %c0_i32 = arith.constant 0 : i32
    %c0_i32_0 = arith.constant 0 : i32
    return %c0_i32, %1 : i32, i32
  }
  func.func @transform_1(%arg0: i32, %arg1: i32) -> (i32, i32) {
    %c1_i32 = arith.constant 1 : i32
    %0 = arith.muli %arg0, %c1_i32 : i32
    %1 = arith.addi %0, %arg1 : i32
    %c0_i32 = arith.constant 0 : i32
    %c0_i32_0 = arith.constant 0 : i32
    return %c0_i32, %1 : i32, i32
  }
  func.func @transform_2(%arg0: i32, %arg1: i32) -> (i32, i32) {
    %c1_i32 = arith.constant 1 : i32
    %0 = arith.muli %arg0, %c1_i32 : i32
    %1 = arith.addi %0, %arg1 : i32
    %c0_i32 = arith.constant 0 : i32
    %c0_i32_0 = arith.constant 0 : i32
    return %c0_i32, %1 : i32, i32
  }
  func.func @transform_3(%arg0: i32, %arg1: i32) -> (i32, i32) {
    %c0_i32 = arith.constant 0 : i32
    %c0_i32_0 = arith.constant 0 : i32
    return %arg0, %c0_i32 : i32, i32
  }
}

</mosaic_0001>

<bundles_post_ra>
// kernel: tpu_custom_call.1
= control target key start
LH: loop header
LB: loop body
LE: loop exit
PB: predicated region body
PF: predicated region fallthrough
CT: control target
= control target key end

     0   :  { %8 = vsyncpa [#allocation3], 0  ;;  %s893_s0 = inlined_call_operand.hbm [shape: f32[17,256], index: 0, kind: input, shape index: {}]   ;;  %s894_s1 = inlined_call_operand.vmem [shape: f32[1,256], index: 1, kind: input, shape index: {}]   ;;  %s895_s2 = inlined_call_operand.vmem [shape: f32[1,256], index: 2, kind: input, shape index: {}]   ;;  %s896_s3 = inlined_call_operand.hbm [shape: f32[16,128], index: 3, kind: output, shape index: {}]  }
   0x1   :  { %10 = vsyncpa [#allocation3 + $0x1], 0 }
   0x2   :  { %11 = vsyncpa [#allocation4], 0 }
   0x3   :  { %13 = vsyncpa [#allocation4 + $0x1], 0  ;;  %s705_s12 = smov 0   ;;  %s707_s13 = smov 0  }
   0x4   :  { %s709_s14 = smov 0   ;;  %s711_s15 = smov 0  }
   0x5   :  { %s713_s16 = smov 0   ;;  %s715_s17 = smov 0  }
   0x6 LB: > { %s474_s18 = sadd.s32 4294967295, %s678_s17   ;;  %s475_s19 = sadd.s32 4294967294, %s678_s17   ;;  %s678_s17 = sphi %s715_s17, %s19_s17   ;;  %s674_s16 = sphi %s713_s16, %s910_s16   ;;  %s670_s15 = sphi %s711_s15, %s909_s15   ;;  %s666_s14 = sphi %s709_s14, %s908_s14   ;;  %s662_s13 = sphi %s707_s13, %s907_s13   ;;  %s658_s12 = sphi %s705_s12, %s906_s12  }
   0x7   : > { %s31_s20 = sadd.s32 1, %s674_s16  ;;  %s40_s21 = sadd.s32 1, %s666_s14 }
   0x8   : > { %p33_p0 = scmp.ge.s32.totalorder %s31_s20, 2  ;;  %p47_p1 = scmp.ne.s32.totalorder %s666_s14, %s662_s13 }
   0x9   : > { %p48_p2 = scmp.eq.s32.totalorder %s678_s17, 0  ;;  %p53_p3 = scmp.ne.s32.totalorder %s662_s13, %s658_s12 }
   0xa   : > { %s912_s20 = smov (%p33_p0, %s31_s20), 0  ;;  %p54_p5 = scmp.eq.s32.totalorder %s474_s18, 0 }
   0xb   : > { %p746_p4 = por %p48_p2, %p47_p1  ;;  %s37_s23 = ssub.s32 %s674_s16, %s912_s20 }
   0xc   : > { %p133_p6 = scmp.eq.s32.totalorder %s474_s18, 1  ;;  %p38_p7 = scmp.eq.s32.totalorder %s37_s23, 0 }
   0xd   : > { %p752_p8 = por %p54_p5, %p53_p3  ;;  %p139_p10 = scmp.eq.s32.totalorder %s475_s19, 1 }
   0xe   : > { %p756_p9 = por %p133_p6, %p47_p1  ;;  %p504_p13 = scmp.lt.s32.totalorder %s678_s17, 2 }
   0xf   : > { %s761_s26 = scalar_select %p38_p7, %s666_s14, %s40_s21  }
  0x10   : > { %s900_s25 = scalar_select %p756_p9, 1, 0 }
  0x11   : > { %p763_p11 = por %p139_p10, %p53_p3  ;;  %s159_s28 = sand.u32 1, %s666_s14  }
  0x12   : > { %s486_s29 = smul.u32 24, %s159_s28  ;;  %s478_s30 = sshll.u32 %s674_s16, 7 }
  0x13   : > { %s901_s27 = scalar_select %p763_p11, 1, 0 }
  0x14   : > { %p773_p0 = pnand %p504_p13, %p746_p4  ;;  %s780_s7 = scalar_lea.hbm %s893_s0, %s478_s30 }
  0x15   : > { %s163_s8 = scalar_lea.vmem [#allocation2], %s486_s29  ;;  %s784_s10 = scalar_lea.sflag [#allocation3], %s159_s28 }
  0x16   : > { %s170_s9 = sshll.u32 %s163_s8, 4  ;;  %s566_s11 = scalar_lea.hbm %s780_s7, 384  ;;  %s782_s9 = int_to_ptr.vmem [resolvable:$true] %s170_s9 }
  0x17   : > { %p567_p1 = scmp.ne.s32.totalorder %s780_s7, %s566_s11  ;;  %p568_p2 = pneg %p773_p0 }
  0x18   : > { %s571_s21 = scalar_lea.hbm %s893_s0, 768  ;;  %p572_p5 = scmp.lt.u32.totalorder %s780_s7, %s893_s0 }
  0x19   : > { %p569_p3 = pnand %p568_p2, %p567_p1  ;;  %p573_p6 = scmp.lt.u32.totalorder %s571_s21, %s566_s11 }
  0x1a   : > { %p575_p10 = scmp.lt.u32.totalorder %s566_s11, %s780_s7 }
  0x1b   : > { %p570_p4 = pneg %p569_p3  ;;  %p574_p7 = por %p573_p6, %p572_p5 }
  0x1d   : > { %p576_p13 = por %p575_p10, %p574_p7 }
  0x1f   : > { %p577_p12 = pnand %p576_p13, %p570_p4 }
  0x21   : > { %580 = shalt.err (!%p577_p12)
}
  0x22   : > { %s581_s28 = scalar_lea.vmem %s782_s9, 384  ;;  %s680_s29 = smov [#allocation2]  }
  0x23   : > { %p582_p1 = scmp.ne.s32.totalorder %s782_s9, %s581_s28  ;;  %s586_s30 = sshll.u32 %s680_s29, 4  ;;  %s587_s30 = int_to_ptr.vmem [resolvable:$false] %s586_s30 }
  0x24   : > { %s588_s5 = scalar_lea.vmem %s587_s30, 768  ;;  %p589_p9 = scmp.lt.s32.totalorder %s782_s9, %s587_s30 }
  0x25   : > { %p584_p3 = pnand %p582_p1, %p568_p2  ;;  %p590_p5 = scmp.lt.s32.totalorder %s588_s5, %s581_s28 }
  0x27   : > { %p585_p11 = pneg %p584_p3  ;;  %p591_p6 = por %p590_p5, %p589_p9 }
  0x29   : > { %p592_p7 = pnand %p591_p6, %p585_p11 }
  0x2b   : > { %595 = shalt.err (!%p592_p7)
}
  0x2c   : > { %s681_s6 = smov 256   ;;  %s682_s8 = smov 128  }
  0x2d   : > { %s683_s11 = smov 8   ;;  %p479_p12 = scmp.ge.s32.totalorder %s678_s17, 1 }
  0x2e   : > { %499 = dma.hbm_to_vmem [thread:$0]  (!%p773_p0), %s780_s7, 384, %s782_s9, %s784_s10, %s681_s6, %s682_s8, %s683_s11  }
  0x2f   : > { %p194_p2 = scmp.lt.s32.totalorder %s678_s17, 3 }
  0x31   : > { %p195_p4 = pnand %p479_p12, %p194_p2 }
  0x32   : > { %s815_s18 = sand.u32 (!%p195_p4), 1, %s662_s13  }
  0x33   : > { %198 = sbr.rel (%p195_p4) target bundleno = 347 (0x15b), region = 32  ;;  %s201_s21 = scalar_lea.sflag (!%p195_p4), [#allocation3], %s815_s18 }
  0x34   : > { %s487_s19 = smul.u32 (!%p195_p4), 24, %s815_s18 }
  0x36   : > { %s204_s22 = scalar_lea.vmem (!%p195_p4), [#allocation2], %s487_s19 }
  0x3a   : > { %649 = dma.done.wait (%p752_p8), %s201_s21, 384  }
  0x3b   : > { %651 = vsyncadd (%p752_p8), %s201_s21, 4294966912  ;;  %p237_p9 = scmp.lt.s32.totalorder %s670_s15, 1  ;;  %vm307_vm0 = vcmask 1040384   ;;  %v251_v0 = vld [vmem:[%s204_s22] sm:$0xff]  ;;  %v252_v1 = vld [vmem:[%s204_s22 + $0x8] sm:$0xff]  ;;  %v263_v4 = vlaneseq  ;;  %s480_s29 = sshll.u32 %s815_s18, 3 }
  0x3c   : > { %v253_v2 = vld [vmem:[%s204_s22 + $0x10] sm:$0x1]  ;;  %v317_v6 = vmax.f32 %v251_v0, %v252_v1  ;;  %s483_s30 = sshll.u32 %s670_s15, 7  ;;  %s234_s5 = scalar_lea.vmem [#allocation5], %s480_s29 }
  0x3d   : > { %s825_s4 = scalar_select %p237_p9, %s670_s15, 1  ;;  %v316_v5 = vsel %vm307_vm0, %v253_v2, -inf  ;;  %v264_v10 = vshrl.u32 %v263_v4, 7 }
  0x3e   : > { %v318_v8 = vmax.f32 %v317_v6, %v316_v5  ;;  %s377_s6 = sshll.u32 %s234_s5, 4  ;;  %s844_s21 = scalar_lea.hbm %s896_s3, %s483_s30  ;;  %s846_s6 = int_to_ptr.vmem [resolvable:$true] %s377_s6 }
  0x3f   : > { %s239_s10 = scalar_lea.vmem %s894_s1, %s825_s4  ;;  %v269_v16 = vsub.s32 0, %v264_v10  ;;  %v265_v23 = vadd.s32 8, %v264_v10  ;;  %v266_v27 = vadd.s32 16, %v264_v10  ;;  %s244_s28 = scalar_lea.vmem %s895_s2, %s825_s4 }
  0x40   : > { %v254_v3 = vld [vmem:[%s239_s10] sm:$0x1]  ;;  %v319_v11 = vrot.slane %v318_v8, 4  ;;  %s364_s22 = scalar_lea.sflag [#allocation4], %s815_s18  ;;  %s596_s4 = scalar_lea.vmem %s846_s6, 128 }
  0x41   : > { %v481_v7 = vclamps-f32 %v254_v3, 8.0  ;;  %p597_p8 = scmp.ne.s32.totalorder %s846_s6, %s596_s4  ;;  %p903_p11 = scmp.ne.s32.totalorder %s900_s25, 0 }
  0x42   : > { %v320_v13 = vmax.f32 %v318_v8, %v319_v11  ;;  %s684_s15 = smov [#allocation5]  }
  0x43   : > { %v257_v9 = vadd.f32 8.0, %v481_v7  ;;  %p598_p0 = pnand %p597_p8, %p903_p11  ;;  %s600_s7 = sshll.u32 %s684_s15, 4  ;;  %s601_s7 = int_to_ptr.vmem [resolvable:$false] %s600_s7 }
  0x44   : > { %v321_v17 = vrot.slane %v320_v13, 2  ;;  %s602_s9 = scalar_lea.vmem %s601_s7, 256  ;;  %p603_p13 = scmp.lt.s32.totalorder %s846_s6, %s601_s7 }
  0x45   : > { %v258_v12 = vfloor.f32 %v257_v9  ;;  %p599_p10 = pneg %p598_p0  ;;  %p604_p1 = scmp.lt.s32.totalorder %s602_s9, %s596_s4 }
  0x46   : > { %v322_v19 = vmax.f32 %v320_v13, %v321_v17 }
  0x47   : > { %v488_v14 = vtrunc.f32 %v258_v12  ;;  %v260_v15 = vadd.f32 1.0, %v258_v12  ;;  %v262_v22 = vsub.f32 %v257_v9, %v258_v12  ;;  %p605_p3 = por %p604_p1, %p603_p13 }
  0x48   : > { %v323_v25 = vrot.slane %v322_v19, 1 }
  0x49   : > { %v489_v18 = vcvt.f32.s32 %v488_v14  ;;  %v261_v20 = vsub.f32 %v260_v15, %v257_v9  ;;  %v295_v30 = vrot.slane %v262_v22, %v269_v16  ;;  %v347_v9 = vld [vmem:[%s244_s28] sm:$0x1]  ;;  %p606_p5 = pnand %p605_p3, %p599_p10 }
  0x4a   : > { %v324_v28 = vmax.f32 %v322_v19, %v323_v25 }
  0x4b   : > { %v283_v21 = vadd.s32 1, %v489_v18  ;;  %v270_v24 = vrot.slane %v489_v18, %v269_v16  ;;  %v278_v29 = vrot.slane %v261_v20, %v269_v16 }
  0x4c   : > { %v325_v31 = vsub.f32 %v251_v0, %v324_v28  ;;  %v326_v32 = vsub.f32 %v252_v1, %v324_v28  ;;  %v327_v33 = vsub.f32 %v253_v2, %v324_v28 }
  0x4d   : > { %v287_v26 = vrot.slane %v283_v21, %v269_v16  ;;  %vm271_vm1 = vcmp.eq.s32.totalorder %v264_v10, %v270_v24  ;;  %vm272_vm2 = vcmp.eq.s32.totalorder %v265_v23, %v270_v24  ;;  %vm273_vm5 = vcmp.eq.s32.totalorder %v266_v27, %v270_v24 }
  0x4e   : > { %v328_v34 = vmul.f32 1.442695, %v325_v31  ;;  %v280_v35 = vsel %vm271_vm1, %v278_v29, 0.0  ;;  %v281_v36 = vsel %vm272_vm2, %v278_v29, 0.0  ;;  %v330_v37 = vmul.f32 1.442695, %v326_v32 }
  0x4f   : > { %vm288_vm3 = vcmp.eq.s32.totalorder %v264_v10, %v287_v26  ;;  %vm289_vm4 = vcmp.eq.s32.totalorder %v265_v23, %v287_v26  ;;  %vm290_vm6 = vcmp.eq.s32.totalorder %v266_v27, %v287_v26  ;;  %v332_v40 = vmul.f32 1.442695, %v327_v33 }
  0x50   : > { %v297_v38 = vsel %vm288_vm3, %v295_v30, 0.0  ;;  %v298_v39 = vsel %vm289_vm4, %v295_v30, 0.0  ;;  %558 = vpow2.f32 %v328_v34  ;;  %v282_v41 = vsel %vm273_vm5, %v278_v29, 0.0 }
  0x51   : > { %v299_v42 = vsel %vm290_vm6, %v295_v30, 0.0  ;;  %560 = vpow2.f32 %v330_v37  ;;  %v300_v43 = vadd.f32 %v297_v38, %v280_v35  ;;  %v301_v44 = vadd.f32 %v298_v39, %v281_v36 }
  0x52   : > { %562 = vpow2.f32 %v332_v40  ;;  %v302_v45 = vadd.f32 %v299_v42, %v282_v41 }
  0x53   : > { %v303_v46 = vmul.f32 %v300_v43, %v251_v0  ;;  %v304_v47 = vmul.f32 %v301_v44, %v252_v1 }
  0x54   : > { %v305_v48 = vmul.f32 %v302_v45, %v253_v2 }
  0x55   : > { %v306_v51 = vadd.f32 %v304_v47, %v303_v46 }
  0x56   : > { %v308_v53 = vsel %vm307_vm0, %v305_v48, 0.0 }
  0x57   : > { %v309_v57 = vadd.f32 %v308_v53, %v306_v51 }
  0x59   : > { %v310_v60 = vrot.slane %v309_v57, 4 }
  0x5a   : > { %v559_v49 = vpop.eup %558 }
  0x5b   : > { %v561_v50 = vpop.eup %560  ;;  %v311_v63 = vadd.f32 %v310_v60, %v309_v57 }
  0x5c   : > { %v563_v52 = vpop.eup %562  ;;  %v334_v54 = vadd.f32 %v561_v50, %v559_v49 }
  0x5d   : > { %v335_v55 = vsel %vm307_vm0, %v563_v52, 0.0  ;;  %v312_v2 = vrot.slane %v311_v63, 2 }
  0x5e   : > { %v336_v56 = vadd.f32 %v335_v55, %v334_v54 }
  0x5f   : > { %v313_v3 = vadd.f32 %v312_v2, %v311_v63 }
  0x60   : > { %v337_v58 = vrot.slane %v336_v56, 4 }
  0x61   : > { %v314_v4 = vrot.slane %v313_v3, 1 }
  0x62   : > { %v338_v59 = vadd.f32 %v337_v58, %v336_v56 }
  0x63   : > { %v315_v6 = vadd.f32 %v314_v4, %v313_v3 }
  0x64   : > { %v339_v61 = vrot.slane %v338_v59, 2 }
  0x66   : > { %v340_v62 = vadd.f32 %v339_v61, %v338_v59 }
  0x68   : > { %v341_v0 = vrot.slane %v340_v62, 1 }
  0x6a   : > { %v342_v1 = vadd.f32 %v341_v0, %v340_v62 }
  0x6c   : > { %564 = vlog2.f32 %v342_v1 }
  0x76   : > { %v565_v5 = vpop.eup %564 }
  0x77   : > { %v344_v7 = vmul.f32 0.6931472, %v565_v5 }
  0x79   : > { %v345_v8 = vadd.f32 %v344_v7, %v324_v28 }
  0x7b   : > { %v346_v10 = vsub.f32 %v345_v8, %v315_v6 }
  0x7d   : > { %v348_v11 = vmul.f32 %v347_v9, %v346_v10 }
  0x7f   : > { %v350_v12 = vsel %vm307_vm0, %v348_v11, 0.0 }
  0x80   : > { %351 = vadd.xlane.f32.xlu0 %v350_v12 }
 0x10d   : > { %v352_v13 = vpop.xlane.xlu0 %351 }
 0x10e   : > { %v353_v14 = vrot.slane %v352_v13, 4 }
 0x110   : > { %v354_v15 = vadd.f32 %v353_v14, %v352_v13 }
 0x112   : > { %v355_v16 = vrot.slane %v354_v15, 2 }
 0x114   : > { %v356_v17 = vadd.f32 %v355_v16, %v354_v15 }
 0x116   : > { %v357_v18 = vrot.slane %v356_v17, 1 }
 0x118   : > { %v358_v19 = vadd.f32 %v357_v18, %v356_v17 }
 0x11a   : > { %490 = vpush %v358_v19 }
 0x14b   : > { %s491_s8 = spop %490 }
 0x14c   : > { %v360_v20 = vstv %s491_s8 }
 0x14d   : > { %362 = vst [vmem:[%s234_s5] sm:$0xff] %v360_v20 }
 0x14e   : > { %609 = shalt.err (!%p606_p5)
}
 0x14f   : > { %s610_s18 = scalar_lea.hbm %s844_s21, 128  ;;  %s614_s23 = scalar_lea.hbm %s896_s3, 256 }
 0x150   : > { %p611_p6 = scmp.ne.s32.totalorder %s844_s21, %s610_s18  ;;  %p615_p2 = scmp.lt.u32.totalorder %s844_s21, %s896_s3 }
 0x151   : > { %p616_p4 = scmp.lt.u32.totalorder %s614_s23, %s610_s18  ;;  %p618_p8 = scmp.lt.u32.totalorder %s610_s18, %s844_s21 }
 0x152   : > { %p612_p7 = pnand %p611_p6, %p903_p11 }
 0x153   : > { %p617_p9 = por %p616_p4, %p615_p2 }
 0x154   : > { %p613_p12 = pneg %p612_p7 }
 0x155   : > { %p619_p0 = por %p618_p8, %p617_p9 }
 0x157   : > { %p620_p10 = pnand %p619_p0, %p613_p12 }
 0x159   : > { %623 = shalt.err (!%p620_p10)
}
 0x15a   : > { %494 = dma.vmem_to_hbm [thread:$0]  (%p903_p11), %s846_s6, 128, %s844_s21, %s364_s22  }
 0x15b PF: > { %s389_s30 = sand.u32 1, %s658_s12   ;;  %p904_p13 = scmp.ne.s32.totalorder %s901_s27, 0 }
 0x15c   : > { %p905_p1 = scmp.ge.s32.totalorder %s678_s17, 2  ;;  %s390_s5 = scalar_lea.sflag [#allocation4], %s389_s30 }
 0x15e   : > { %p501_p3 = pnand %p905_p1, %p904_p13 }
 0x160   : > { %653 = dma.done.wait (!%p501_p3), %s390_s5, 128  }
 0x161   : > { %655 = vsyncadd (!%p501_p3), %s390_s5, 4294967168  ;;  %s19_s17 = sadd.s32 1, %s678_s17   ;;  %s906_s12 = smov %s662_s13 }
 0x162   : > { %p16_p5 = scmp.ge.s32.totalorder %s19_s17, 4   ;;  %s907_s13 = smov %s666_s14 }
 0x163   : > { %s908_s14 = smov %s761_s26  ;;  %s909_s15 = smov %s674_s16 }
 0x164   : > { %s910_s16 = smov %s912_s20  ;;  %18 = sbr.rel (!%p16_p5) target bundleno = 6 (0x6), region = 87 }
 0x16b   :  { %395 = vsyncpa [#allocation3], 1 }
 0x16c   :  { %397 = vsyncpa [#allocation3 + $0x1], 1 }
 0x16d   :  { %398 = vsyncpa [#allocation4], 1 }
 0x16e   :  { %400 = vsyncpa [#allocation4 + $0x1], 1 }

</bundles_post_ra>
